<compile_context>
chip_gen: v6e
topology: v6e:2x2x1
jax: 0.10.0
libtpu: 0.0.40
codegen_flags: <defaults>
</compile_context>

<pallas_src>
import functools

import jax
import jax.numpy as jnp
from jax.experimental import pallas as pl
from jax.experimental.pallas import tpu as pltpu

# ---------------- config (scaled down from the PyTorch module) ----------------
ENCODE_LAYER = 12                 # number of BERT layers whose CLS is used
FILTER_SIZES = (2, 2, 2)          # all equal -> one shared tap structure
NUM_FILTERS = 3
N_CLASS = 2
NUM_FILTER_TOTAL = NUM_FILTERS * len(FILTER_SIZES)   # 9

HIDDEN = 32                       # scaled down from 768 (small-shape run)
NUM_HEADS = 4
HEAD_DIM = HIDDEN // NUM_HEADS
FFN = 64
SEQ = 8
BATCH = 2
VOCAB = 50
TYPE_VOCAB = 2

# ---- kernel-side padded geometry ---------------------------------------------
FS = FILTER_SIZES[0]
LC = ENCODE_LAYER - FS + 1        # 11 valid conv positions
LC_PAD = 16                       # conv positions padded to a multiple of 8
X_ROWS = LC_PAD + 8               # 24 CLS rows per sample (12 real + zero pad),
                                  # so the tap-1 slice [1:17] never runs off the end
NP = 128                          # 9 conv channels / 2 classes zero-padded to 128 lanes


# ------------------------------ Pallas kernel ---------------------------------
def _textcnn_kernel(x_ref, cw0_ref, cw1_ref, cb_ref, lw_ref, lb_ref, out_ref, *, bt):
    # x_ref  : (bt, X_ROWS, HIDDEN) bf16  CLS stack (rows >= 12 are zero)
    # cw0_ref: (HIDDEN, NP)         bf16  fused tap-0 conv weights (conv-major cols)
    # cw1_ref: (HIDDEN, NP)         bf16  fused tap-1 conv weights
    # cb_ref : (1, NP)              f32   fused conv bias (zero in padded lanes)
    # lw_ref : (NP, NP)             bf16  Linear(9,2,bias=False).weight.T zero-padded
    # lb_ref : (1, NP)              f32   the extra ones-bias, zero in padded lanes
    # out_ref: (bt, NP)             f32   lane-dense logits (real classes in lanes 0..1)
    x = x_ref[...]                                            # (bt, 24, H) bf16
    x0 = x[:, :LC_PAD, :].reshape(bt * LC_PAD, HIDDEN)        # tap-0 rows i
    x1 = x[:, 1:LC_PAD + 1, :].reshape(bt * LC_PAD, HIDDEN)   # tap-1 rows i+1
    # conv = two half-K bf16 GEMMs with f32 accumulation (in-kernel im2col)
    h = jnp.dot(x0, cw0_ref[...], preferred_element_type=jnp.float32)
    h = h + jnp.dot(x1, cw1_ref[...], preferred_element_type=jnp.float32)
    h = jnp.maximum(h + cb_ref[...], 0.0)                     # bias + ReLU, f32
    h = h.reshape(bt, LC_PAD, NP)
    # Mask padded conv positions (rows >= LC mix real/zero rows and are not valid
    # tap pairs); ReLU output >= 0 so zeroing them cannot change the max-pool.
    pos = jax.lax.broadcasted_iota(jnp.int32, (LC_PAD, 1), 0)
    h = jnp.where(pos < LC, h, 0.0)
    pooled = jnp.max(h, axis=1)                               # (bt, NP), MaxPool
    # final linear: native bf16 MXU GEMM, f32 accumulation
    out_ref[...] = (jnp.dot(pooled.astype(jnp.bfloat16), lw_ref[...],
                            preferred_element_type=jnp.float32)
                    + lb_ref[...])


def _choose_batch_tile(b):
    """Batch tile: up to 128 rows per step, always >= 2 grid steps (v7x megacore)."""
    bt = max(8, min(128, 8 * pl.cdiv(b, 16)))
    n_steps = max(2, pl.cdiv(b, bt))
    return bt, n_steps * bt


def textcnn_forward(cls_emb, cw0, cw1, cb, lw, lb):
    """TextCNN head as one Pallas call, batch-tiled with a parallel grid."""
    b = cls_emb.shape[0]
    bt, b_pad = _choose_batch_tile(b)
    # wrapper-side plumbing is now only dtype cast + zero pad (no im2col / HBM blowup)
    x = jnp.pad(cls_emb.astype(jnp.bfloat16),
                ((0, b_pad - b), (0, X_ROWS - ENCODE_LAYER), (0, 0)))
    out = pl.pallas_call(
        functools.partial(_textcnn_kernel, bt=bt),
        out_shape=jax.ShapeDtypeStruct((b_pad, NP), jnp.float32),
        grid_spec=pltpu.PrefetchScalarGridSpec(
            num_scalar_prefetch=0,
            grid=(b_pad // bt,),
            in_specs=[
                pl.BlockSpec((bt, X_ROWS, HIDDEN), lambda i: (i, 0, 0)),
                pl.BlockSpec((HIDDEN, NP), lambda i: (0, 0)),
                pl.BlockSpec((HIDDEN, NP), lambda i: (0, 0)),
                pl.BlockSpec((1, NP), lambda i: (0, 0)),
                pl.BlockSpec((NP, NP), lambda i: (0, 0)),
                pl.BlockSpec((1, NP), lambda i: (0, 0)),
            ],
            out_specs=pl.BlockSpec((bt, NP), lambda i: (i, 0)),
        ),
        compiler_params=pltpu.CompilerParams(
            dimension_semantics=("parallel",)),
    )(x, cw0, cw1, cb, lw, lb)
    return out[:b, :N_CLASS]


# -------------------- plain-JAX f32 reference of the TextCNN ------------------
def textcnn_reference(cls_emb, conv_w, conv_b, lin_w, lin_b):
    x = cls_emb.astype(jnp.float32)
    feats = []
    for i, fs in enumerate(FILTER_SIZES):
        lc = ENCODE_LAYER - fs + 1
        taps = [jnp.einsum("blh,fh->blf", x[:, k:k + lc, :], conv_w[i][:, k, :])
                for k in range(fs)]
        h = jax.nn.relu(sum(taps) + conv_b[i][None, None, :])
        feats.append(jnp.max(h, axis=1))                 # MaxPool2d((L-fs+1, 1))
    hp = jnp.concatenate(feats, axis=-1)                 # conv-major concat
    return hp @ lin_w.T + lin_b[None, :]


# ---------------------------- TextCNN parameters -------------------------------
def init_textcnn_params(key):
    ks = jax.random.split(key, 2 * len(FILTER_SIZES) + 1)
    conv_w, conv_b = [], []
    for i, fs in enumerate(FILTER_SIZES):
        conv_w.append(0.1 * jax.random.normal(
            ks[2 * i], (NUM_FILTERS, fs, HIDDEN), jnp.float32))   # Conv2d weight[:,0]
        conv_b.append(0.1 * jax.random.normal(
            ks[2 * i + 1], (NUM_FILTERS,), jnp.float32))
    lin_w = 0.1 * jax.random.normal(ks[-1], (N_CLASS, NUM_FILTER_TOTAL), jnp.float32)
    lin_b = jnp.ones((N_CLASS,), jnp.float32)   # nn.Parameter(torch.ones([n_class]))
    # NOTE: Bert_Blend_CNN.__init__ also defines self.linear = nn.Linear(768, 2)
    # which is never used in forward(), so it is intentionally omitted.
    return conv_w, conv_b, lin_w, lin_b


def fuse_textcnn_params(conv_w, conv_b, lin_w, lin_b):
    """Fuse all convs into per-tap conv-major GEMM weights, lane-dense padded."""
    assert all(fs == FS for fs in FILTER_SIZES)
    # tap-k weight column 3*i+f  <->  conv i, filter f:  cw_k[h, 3i+f] = w_i[f, k, h]
    cw0 = jnp.concatenate([w[:, 0, :].T for w in conv_w], axis=-1)    # (H, 9)
    cw1 = jnp.concatenate([w[:, 1, :].T for w in conv_w], axis=-1)    # (H, 9)
    cw0 = jnp.pad(cw0, ((0, 0), (0, NP - NUM_FILTER_TOTAL))).astype(jnp.bfloat16)
    cw1 = jnp.pad(cw1, ((0, 0), (0, NP - NUM_FILTER_TOTAL))).astype(jnp.bfloat16)
    cb = jnp.pad(jnp.concatenate(conv_b), (0, NP - NUM_FILTER_TOTAL)).reshape(1, NP)
    lw = jnp.pad(lin_w.T, ((0, NP - NUM_FILTER_TOTAL), (0, NP - N_CLASS)))
    lw = lw.astype(jnp.bfloat16)                                      # bf16 2nd GEMM
    lb = jnp.pad(lin_b, (0, NP - N_CLASS)).reshape(1, NP)
    return cw0, cw1, cb, lw, lb


# ------------------- synthetic BERT encoder (plain JAX glue) -------------------
# TODO(synk): the real module loads a pretrained HuggingFace BERT checkpoint
# (AutoModel.from_pretrained, output_hidden_states=True); replaced here by a
# deterministic randomly-initialized BERT-style encoder with the same structure
# (embeddings + 12 transformer layers, per-layer hidden states), scaled down to
# HIDDEN=32, SEQ=8.  It stays in XLA; only its CLS stack feeds the Pallas kernel.
def _layer_norm(x, gamma, beta, eps=1e-12):
    mu = jnp.mean(x, axis=-1, keepdims=True)
    var = jnp.var(x, axis=-1, keepdims=True)
    return (x - mu) / jnp.sqrt(var + eps) * gamma + beta


def init_bert_params(key):
    def dense(k, fan_in, fan_out):
        return (0.02 * jax.random.normal(k, (fan_in, fan_out), jnp.float32),
                jnp.zeros((fan_out,), jnp.float32))

    keys = jax.random.split(key, 4 + ENCODE_LAYER)
    params = {
        "word_emb": 0.02 * jax.random.normal(keys[0], (VOCAB, HIDDEN), jnp.float32),
        "pos_emb": 0.02 * jax.random.normal(keys[1], (SEQ, HIDDEN), jnp.float32),
        "type_emb": 0.02 * jax.random.normal(keys[2], (TYPE_VOCAB, HIDDEN), jnp.float32),
        "emb_ln": (jnp.ones((HIDDEN,), jnp.float32), jnp.zeros((HIDDEN,), jnp.float32)),
        "layers": [],
    }
    for l in range(ENCODE_LAYER):
        ks = jax.random.split(keys[4 + l], 6)
        params["layers"].append({
            "q": dense(ks[0], HIDDEN, HIDDEN),
            "k": dense(ks[1], HIDDEN, HIDDEN),
            "v": dense(ks[2], HIDDEN, HIDDEN),
            "o": dense(ks[3], HIDDEN, HIDDEN),
            "ffn1": dense(ks[4], HIDDEN, FFN),
            "ffn2": dense(ks[5], FFN, HIDDEN),
            "ln1": (jnp.ones((HIDDEN,), jnp.float32), jnp.zeros((HIDDEN,), jnp.float32)),
            "ln2": (jnp.ones((HIDDEN,), jnp.float32), jnp.zeros((HIDDEN,), jnp.float32)),
        })
    return params


def _bert_layer(h, attn_bias, p):
    B, S, H = h.shape

    def proj(x, wb):
        w, b = wb
        return x @ w + b

    q = proj(h, p["q"]).reshape(B, S, NUM_HEADS, HEAD_DIM)
    k = proj(h, p["k"]).reshape(B, S, NUM_HEADS, HEAD_DIM)
    v = proj(h, p["v"]).reshape(B, S, NUM_HEADS, HEAD_DIM)
    scores = jnp.einsum("bqhd,bkhd->bhqk", q, k) / jnp.sqrt(jnp.float32(HEAD_DIM))
    probs = jax.nn.softmax(scores + attn_bias, axis=-1)
    ctx = jnp.einsum("bhqk,bkhd->bqhd", probs, v).reshape(B, S, H)
    h = _layer_norm(h + proj(ctx, p["o"]), *p["ln1"])
    ffn = proj(jax.nn.gelu(proj(h, p["ffn1"])), p["ffn2"])
    return _layer_norm(h + ffn, *p["ln2"])


def synthetic_bert_cls_embeddings(params, input_ids, attention_mask, token_type_ids):
    emb = (params["word_emb"][input_ids]
           + params["pos_emb"][jnp.arange(input_ids.shape[1])][None]
           + params["type_emb"][token_type_ids])
    h = _layer_norm(emb, *params["emb_ln"])
    attn_bias = (1.0 - attention_mask[:, None, None, :].astype(jnp.float32)) * -1e9
    cls_list = []
    for p in params["layers"]:                 # hidden_states[1] .. hidden_states[12]
        h = _bert_layer(h, attn_bias, p)
        cls_list.append(h[:, 0, :])            # CLS token of each layer
    return jnp.stack(cls_list, axis=1)         # (B, 12, HIDDEN)


def bert_blend_cnn_forward(bert_params, fused_cnn_params, X):
    input_ids, attention_mask, token_type_ids = X
    cls_emb = synthetic_bert_cls_embeddings(bert_params, input_ids,
                                            attention_mask, token_type_ids)
    return textcnn_forward(cls_emb, *fused_cnn_params), cls_emb


# ------------------------------------ main -------------------------------------
if __name__ == "__main__":
    key = jax.random.PRNGKey(0)
    k_bert, k_cnn, k_ids = jax.random.split(key, 3)

    bert_params = init_bert_params(k_bert)
    conv_w, conv_b, lin_w, lin_b = init_textcnn_params(k_cnn)
    fused_cnn_params = fuse_textcnn_params(conv_w, conv_b, lin_w, lin_b)

    input_ids = jax.random.randint(k_ids, (BATCH, SEQ), 0, VOCAB, dtype=jnp.int32)
    attention_mask = jnp.ones((BATCH, SEQ), jnp.int32)
    token_type_ids = jnp.zeros((BATCH, SEQ), jnp.int32)
    X = (input_ids, attention_mask, token_type_ids)

    logits, cls_emb = bert_blend_cnn_forward(bert_params, fused_cnn_params, X)
    logits = jax.block_until_ready(logits)

    ref = textcnn_reference(cls_emb, conv_w, conv_b, lin_w, lin_b)
    if logits.shape != (BATCH, N_CLASS):
        raise RuntimeError("unexpected output shape: %s" % (logits.shape,))
    # bf16 GEMM operands (both matmuls) -> small drift vs the f32 reference
    if not bool(jnp.allclose(logits, ref, atol=3e-2, rtol=3e-2)):
        raise RuntimeError("Pallas kernel does not match reference")
    print("KERNEL_OK")
</pallas_src>

<mosaic_0001>
module attributes {stable_mosaic.version = 11 : i64} {
  func.func @_textcnn_kernel(%arg0: i32, %arg1: memref<8x24x32xbf16, #tpu.memory_space<vmem>>, %arg2: memref<32x128xbf16, #tpu.memory_space<vmem>>, %arg3: memref<32x128xbf16, #tpu.memory_space<vmem>>, %arg4: memref<1x128xf32, #tpu.memory_space<vmem>>, %arg5: memref<128x128xbf16, #tpu.memory_space<vmem>>, %arg6: memref<1x128xf32, #tpu.memory_space<vmem>>, %arg7: memref<8x128xf32, #tpu.memory_space<vmem>>) attributes {dimension_semantics = [#tpu.dimension_semantics<parallel>], iteration_bounds = array<i64: 2>, scalar_prefetch = 0 : i64, scratch_operands = 0 : i64, tpu.core_type = #tpu.core_type<tc>, window_params = [{transform_indices = @transform_0, window_bounds = array<i64: 8, 24, 32>}, {pipeline_mode = #tpu.pipeline_mode<synchronous>, transform_indices = @transform_1, window_bounds = array<i64: 32, 128>}, {pipeline_mode = #tpu.pipeline_mode<synchronous>, transform_indices = @transform_2, window_bounds = array<i64: 32, 128>}, {pipeline_mode = #tpu.pipeline_mode<synchronous>, transform_indices = @transform_3, window_bounds = array<i64: 1, 128>}, {pipeline_mode = #tpu.pipeline_mode<synchronous>, transform_indices = @transform_4, window_bounds = array<i64: 128, 128>}, {pipeline_mode = #tpu.pipeline_mode<synchronous>, transform_indices = @transform_5, window_bounds = array<i64: 1, 128>}, {transform_indices = @transform_6, window_bounds = array<i64: 8, 128>}]} {
    %c0 = arith.constant 0 : index
    %c0_0 = arith.constant 0 : index
    %c0_1 = arith.constant 0 : index
    %0 = vector.load %arg1[%c0, %c0_0, %c0_1] : memref<8x24x32xbf16, #tpu.memory_space<vmem>>, vector<8x24x32xbf16>
    %1 = vector.extract_strided_slice %0 {offsets = [0, 0, 0], sizes = [8, 16, 32], strides = [1, 1, 1]} : vector<8x24x32xbf16> to vector<8x16x32xbf16>
    %2 = vector.shape_cast %1 : vector<8x16x32xbf16> to vector<128x32xbf16>
    %3 = vector.extract_strided_slice %0 {offsets = [0, 1, 0], sizes = [8, 16, 32], strides = [1, 1, 1]} : vector<8x24x32xbf16> to vector<8x16x32xbf16>
    %4 = vector.shape_cast %3 : vector<8x16x32xbf16> to vector<128x32xbf16>
    %c0_2 = arith.constant 0 : index
    %c0_3 = arith.constant 0 : index
    %5 = vector.load %arg2[%c0_2, %c0_3] : memref<32x128xbf16, #tpu.memory_space<vmem>>, vector<32x128xbf16>
    %cst = arith.constant dense<0.000000e+00> : vector<128x128xf32>
    %6 = tpu.matmul %2, %5, %cst {dimension_numbers = #tpu.dot_dimension_numbers<[1], [0], [0], [1], [0, 0, 1, 1], [], []>} : vector<128x32xbf16>, vector<32x128xbf16>, vector<128x128xf32> -> vector<128x128xf32>
    %c0_4 = arith.constant 0 : index
    %c0_5 = arith.constant 0 : index
    %7 = vector.load %arg3[%c0_4, %c0_5] : memref<32x128xbf16, #tpu.memory_space<vmem>>, vector<32x128xbf16>
    %cst_6 = arith.constant dense<0.000000e+00> : vector<128x128xf32>
    %8 = tpu.matmul %4, %7, %cst_6 {dimension_numbers = #tpu.dot_dimension_numbers<[1], [0], [0], [1], [0, 0, 1, 1], [], []>} : vector<128x32xbf16>, vector<32x128xbf16>, vector<128x128xf32> -> vector<128x128xf32>
    %9 = arith.addf %6, %8 : vector<128x128xf32>
    %c0_7 = arith.constant 0 : index
    %c0_8 = arith.constant 0 : index
    %10 = vector.load %arg4[%c0_7, %c0_8] : memref<1x128xf32, #tpu.memory_space<vmem>>, vector<1x128xf32>
    %11 = vector.broadcast %10 : vector<1x128xf32> to vector<128x128xf32>
    %12 = arith.addf %9, %11 : vector<128x128xf32>
    %cst_9 = arith.constant 0.000000e+00 : f32
    %13 = vector.broadcast %cst_9 : f32 to vector<128x128xf32>
    %14 = arith.maximumf %12, %13 : vector<128x128xf32>
    %15 = vector.shape_cast %14 : vector<128x128xf32> to vector<8x16x128xf32>
    %16 = tpu.iota {dimensions = array<i32: 0>} : vector<16x1xi32>
    %c11_i32 = arith.constant 11 : i32
    %17 = vector.broadcast %c11_i32 : i32 to vector<16x1xi32>
    %18 = arith.cmpi slt, %16, %17 : vector<16x1xi32>
    %cst_10 = arith.constant 0.000000e+00 : f32
    %19 = vector.shape_cast %18 : vector<16x1xi1> to vector<1x16x1xi1>
    %20 = vector.broadcast %19 : vector<1x16x1xi1> to vector<8x16x128xi1>
    %21 = vector.broadcast %cst_10 : f32 to vector<8x16x128xf32>
    %22 = arith.select %20, %15, %21 : vector<8x16x128xi1>, vector<8x16x128xf32>
    %cst_11 = arith.constant dense<0xFF800000> : vector<8x128xf32>
    %23 = vector.multi_reduction <maximumf>, %22, %cst_11 [1] : vector<8x16x128xf32> to vector<8x128xf32>
    %24 = arith.truncf %23 : vector<8x128xf32> to vector<8x128xbf16>
    %c0_12 = arith.constant 0 : index
    %c0_13 = arith.constant 0 : index
    %25 = vector.load %arg5[%c0_12, %c0_13] : memref<128x128xbf16, #tpu.memory_space<vmem>>, vector<128x128xbf16>
    %cst_14 = arith.constant dense<0.000000e+00> : vector<8x128xf32>
    %26 = tpu.matmul %24, %25, %cst_14 {dimension_numbers = #tpu.dot_dimension_numbers<[1], [0], [0], [1], [0, 0, 1, 1], [], []>} : vector<8x128xbf16>, vector<128x128xbf16>, vector<8x128xf32> -> vector<8x128xf32>
    %c0_15 = arith.constant 0 : index
    %c0_16 = arith.constant 0 : index
    %27 = vector.load %arg6[%c0_15, %c0_16] : memref<1x128xf32, #tpu.memory_space<vmem>>, vector<1x128xf32>
    %28 = vector.broadcast %27 : vector<1x128xf32> to vector<8x128xf32>
    %29 = arith.addf %26, %28 : vector<8x128xf32>
    %c0_17 = arith.constant 0 : index
    %c0_18 = arith.constant 0 : index
    %30 = vector.load %arg7[%c0_17, %c0_18] : memref<8x128xf32, #tpu.memory_space<vmem>>, vector<8x128xf32>
    tpu.vector_store %arg7[%c0_17, %c0_18], %29 {strides = array<i32>} : memref<8x128xf32, #tpu.memory_space<vmem>>, vector<8x128xf32>,
    return
  }
  func.func @transform_0(%arg0: i32) -> (i32, i32, i32) {
    %c0_i32 = arith.constant 0 : i32
    %c0_i32_0 = arith.constant 0 : i32
    %c0_i32_1 = arith.constant 0 : i32
    return %arg0, %c0_i32, %c0_i32_0 : i32, i32, i32
  }
  func.func @transform_1(%arg0: i32) -> (i32, i32) {
    %c0_i32 = arith.constant 0 : i32
    %c0_i32_0 = arith.constant 0 : i32
    %c0_i32_1 = arith.constant 0 : i32
    return %c0_i32, %c0_i32_0 : i32, i32
  }
  func.func @transform_2(%arg0: i32) -> (i32, i32) {
    %c0_i32 = arith.constant 0 : i32
    %c0_i32_0 = arith.constant 0 : i32
    %c0_i32_1 = arith.constant 0 : i32
    return %c0_i32, %c0_i32_0 : i32, i32
  }
  func.func @transform_3(%arg0: i32) -> (i32, i32) {
    %c0_i32 = arith.constant 0 : i32
    %c0_i32_0 = arith.constant 0 : i32
    %c0_i32_1 = arith.constant 0 : i32
    return %c0_i32, %c0_i32_0 : i32, i32
  }
  func.func @transform_4(%arg0: i32) -> (i32, i32) {
    %c0_i32 = arith.constant 0 : i32
    %c0_i32_0 = arith.constant 0 : i32
    %c0_i32_1 = arith.constant 0 : i32
    return %c0_i32, %c0_i32_0 : i32, i32
  }
  func.func @transform_5(%arg0: i32) -> (i32, i32) {
    %c0_i32 = arith.constant 0 : i32
    %c0_i32_0 = arith.constant 0 : i32
    %c0_i32_1 = arith.constant 0 : i32
    return %c0_i32, %c0_i32_0 : i32, i32
  }
  func.func @transform_6(%arg0: i32) -> (i32, i32) {
    %c0_i32 = arith.constant 0 : i32
    %c0_i32_0 = arith.constant 0 : i32
    return %arg0, %c0_i32 : i32, i32
  }
}

</mosaic_0001>

<bundles_post_ra>
// kernel: tpu_custom_call.1
= control target key start
LH: loop header
LB: loop body
LE: loop exit
PB: predicated region body
PF: predicated region fallthrough
CT: control target
= control target key end

     0   :  { %11 = vsyncpa [#allocation3], 0  ;;  %s2075_s0 = inlined_call_operand.hbm [shape: bf16[16,24,32], index: 0, kind: input, shape index: {}]   ;;  %s2076_s1 = inlined_call_operand.hbm [shape: bf16[32,128], index: 1, kind: input, shape index: {}]   ;;  %s2077_s2 = inlined_call_operand.hbm [shape: bf16[32,128], index: 2, kind: input, shape index: {}]   ;;  %s2078_s3 = inlined_call_operand.vmem [shape: f32[1,128], index: 3, kind: input, shape index: {}]   ;;  %s2079_s4 = inlined_call_operand.hbm [shape: bf16[128,128], index: 4, kind: input, shape index: {}]   ;;  %s2080_s5 = inlined_call_operand.vmem [shape: f32[1,128], index: 5, kind: input, shape index: {}]   ;;  %s2081_s6 = inlined_call_operand.hbm [shape: f32[16,128], index: 6, kind: output, shape index: {}]  }
   0x1   :  { %13 = vsyncpa [#allocation3 + $0x1], 0 }
   0x2   :  { %14 = vsyncpa [#allocation6], 0 }
   0x3   :  { %15 = vsyncpa [#allocation9], 0 }
   0x4   :  { %16 = vsyncpa [#allocation4], 0 }
   0x5   :  { %18 = vsyncpa [#allocation4 + $0x1], 0  ;;  %s1741_s21 = smov 0   ;;  %s1743_s22 = smov 0  }
   0x6   :  { %s1745_s23 = smov 0   ;;  %s1747_s24 = smov 0  }
   0x7 LB: > { %s1762_s25 = sadd.s32 4294967295, %s1695_s24   ;;  %s1260_s26 = sadd.s32 4294967294, %s1695_s24   ;;  %s1695_s24 = sphi %s1747_s24, %s2110_s24   ;;  %s1691_s23 = sphi %s1745_s23, %s2109_s23   ;;  %s1687_s22 = sphi %s1743_s22, %s2108_s22   ;;  %s1683_s21 = sphi %s1741_s21, %s2107_s21  }
   0x8   : > { %p44_p0 = scmp.ne.s32.totalorder %s1687_s22, %s1683_s21  ;;  %p2082_p1 = scmp.eq.s32.totalorder %s1762_s25, 0 }
   0x9   : > { %p173_p2 = scmp.eq.s32.totalorder %s1762_s25, 1  ;;  %p179_p3 = scmp.eq.s32.totalorder %s1260_s26, 1 }
   0xa   : > { %p1771_p4 = por %p2082_p1, %p44_p0  ;;  %p1261_p5 = scmp.ge.s32.totalorder %s1695_s24, 1 }
   0xb   : > { %p1776_p6 = por %p179_p3, %p44_p0  ;;  %p186_p7 = scmp.lt.s32.totalorder %s1695_s24, 3 }
   0xc   : > { %s2088_s27 = scalar_select %p1771_p4, 1, 0 }
   0xd   : > { %s2089_s28 = scalar_select %p1776_p6, 1, 0 }
   0xe   : > { %p1781_p8 = pnand %p1261_p5, %p186_p7  ;;  %s1697_s30 = smov [#allocation5]  }
   0xf   : > { %s198_s7 = sshll.u32 %s1697_s30, 4  ;;  %s1698_s9 = smov [#allocation7]   ;;  %s199_s7 = int_to_ptr.vmem [resolvable:$true] %s198_s7 }
  0x10   : > { %s2090_s29 = scalar_select %p1781_p8, 1, 0 }
  0x11   : > { %p1432_p9 = pneg %p1781_p8  ;;  %s211_s10 = sshll.u32 %s1698_s9, 4  ;;  %s212_s10 = int_to_ptr.vmem [resolvable:$true] %s211_s10 }
  0x12   : > { %s1699_s11 = smov [#allocation8]   ;;  %s1528_s13 = scalar_lea.vmem %s199_s7, 256 }
  0x13   : > { %p1790_p11 = pnand %p1432_p9, %p2082_p1  ;;  %s227_s12 = sshll.u32 %s1699_s11, 4  ;;  %s228_s12 = int_to_ptr.vmem [resolvable:$true] %s227_s12 }
  0x14   : > { %p1529_p13 = scmp.ne.s32.totalorder %s199_s7, %s1528_s13  ;;  %p1536_p5 = scmp.lt.s32.totalorder %s199_s7, %s199_s7 }
  0x15   : > { %p1519_p12 = pneg %p1790_p11  ;;  %p1537_p7 = scmp.lt.s32.totalorder %s1528_s13, %s1528_s13 }
  0x17   : > { %p1531_p0 = pnand %p1529_p13, %p1519_p12  ;;  %p1538_p9 = por %p1537_p7, %p1536_p5 }
  0x19   : > { %p1532_p3 = pneg %p1531_p0 }
  0x1b   : > { %p1539_p10 = pnand %p1538_p9, %p1532_p3 }
  0x1d   : > { %1542 = shalt.err (!%p1539_p10)
}
  0x1e   : > { %s2083_s14 = smov 64   ;;  %s2084_s15 = smov 4  }
  0x1f   : > { %1435 = dma.hbm_to_vmem [thread:$0]  (!%p1790_p11), %s2076_s1, 256, %s199_s7, [#allocation6], %s2083_s14, %s2083_s14, %s2084_s15  }
  0x20   : > { %s1554_s18 = scalar_lea.vmem %s212_s10, 256  ;;  %p1562_p3 = scmp.lt.s32.totalorder %s212_s10, %s212_s10 }
  0x21   : > { %p1555_p13 = scmp.ne.s32.totalorder %s212_s10, %s1554_s18  ;;  %p1563_p10 = scmp.lt.s32.totalorder %s1554_s18, %s1554_s18 }
  0x23   : > { %p1557_p0 = pnand %p1555_p13, %p1519_p12  ;;  %p1564_p7 = por %p1563_p10, %p1562_p3 }
  0x25   : > { %p1558_p5 = pneg %p1557_p0 }
  0x27   : > { %p1565_p9 = pnand %p1564_p7, %p1558_p5 }
  0x29   : > { %1568 = shalt.err (!%p1565_p9)
}
  0x2a   : > { %1438 = dma.hbm_to_vmem [thread:$0]  (!%p1790_p11), %s2077_s2, 256, %s212_s10, [#allocation6], %s2083_s14, %s2083_s14, %s2084_s15  }
  0x2b   : > { %s1580_s26 = scalar_lea.vmem %s228_s12, 1024  ;;  %p1588_p3 = scmp.lt.s32.totalorder %s228_s12, %s228_s12 }
  0x2c   : > { %p1581_p1 = scmp.ne.s32.totalorder %s228_s12, %s1580_s26  ;;  %p1589_p5 = scmp.lt.s32.totalorder %s1580_s26, %s1580_s26 }
  0x2e   : > { %p1583_p13 = pnand %p1581_p1, %p1519_p12  ;;  %p1590_p10 = por %p1589_p5, %p1588_p3 }
  0x30   : > { %p1584_p0 = pneg %p1583_p13 }
  0x32   : > { %p1591_p7 = pnand %p1590_p10, %p1584_p0 }
  0x34   : > { %1594 = shalt.err (!%p1591_p7)
}
  0x35   : > { %1441 = dma.hbm_to_vmem [thread:$0]  (!%p1790_p11), %s2079_s4, 1024, %s228_s12, [#allocation9], %s2083_s14, %s2083_s14, %s2084_s15  }
  0x36   : > { %s1830_s9 = sadd.s32 1, %s1695_s24   ;;  %s31_s10 = sadd.s32 1, %s1691_s23 }
  0x37   : > { %s28_s8 = ssub.s32 %s1695_s24, %s1830_s9  ;;  %p38_p12 = scmp.ne.s32.totalorder %s1691_s23, %s1687_s22 }
  0x38   : > { %p29_p1 = scmp.eq.s32.totalorder %s28_s8, 0  ;;  %p39_p9 = scmp.eq.s32.totalorder %s1695_s24, 0 }
  0x39   : > { %p1453_p13 = scmp.lt.s32.totalorder %s1695_s24, 2  ;;  %p1844_p3 = por %p173_p2, %p38_p12 }
  0x3a   : > { %s1840_s11 = scalar_select %p29_p1, %s1691_s23, %s31_s10  }
  0x3b   : > { %p40_p0 = por %p39_p9, %p38_p12  ;;  %s244_s16 = sand.u32 1, %s1691_s23  }
  0x3c   : > { %s2092_s13 = scalar_select %p1844_p3, 1, 0 }
  0x3d   : > { %s1414_s17 = smul.u32 1536, %s1695_s24  ;;  %p1850_p11 = pnand %p1453_p13, %p40_p0 }
  0x3e   : > { %s1413_s12 = smul.u32 96, %s244_s16  ;;  %s1861_s8 = scalar_lea.sflag [#allocation3], %s244_s16 }
  0x3f   : > { %s1857_s26 = scalar_lea.hbm %s2075_s0, %s1414_s17  ;;  %p1597_p5 = pneg %p1850_p11 }
  0x40   : > { %s248_s30 = scalar_lea.vmem [#allocation2], %s1413_s12  ;;  %s1595_s10 = scalar_lea.hbm %s1857_s26, 1536 }
  0x41   : > { %s256_s7 = sshll.u32 %s248_s30, 4  ;;  %p1596_p2 = scmp.ne.s32.totalorder %s1857_s26, %s1595_s10  ;;  %s1859_s7 = int_to_ptr.vmem [resolvable:$true] %s256_s7 }
  0x42   : > { %s1600_s17 = scalar_lea.hbm %s2075_s0, 3072  ;;  %p1601_p1 = scmp.lt.s32.totalorder %s1857_s26, %s2075_s0 }
  0x43   : > { %p1598_p10 = pnand %p1597_p5, %p1596_p2  ;;  %p1602_p12 = scmp.lt.s32.totalorder %s1600_s17, %s1595_s10 }
  0x45   : > { %p1599_p7 = pneg %p1598_p10  ;;  %p1603_p9 = por %p1602_p12, %p1601_p1 }
  0x47   : > { %p1604_p13 = pnand %p1603_p9, %p1599_p7 }
  0x49   : > { %1607 = shalt.err (!%p1604_p13)
}
  0x4a   : > { %s1608_s16 = scalar_lea.vmem %s1859_s7, 1536  ;;  %s1702_s12 = smov [#allocation2]  }
  0x4b   : > { %p1609_p0 = scmp.ne.s32.totalorder %s1859_s7, %s1608_s16  ;;  %s1613_s30 = sshll.u32 %s1702_s12, 4  ;;  %s1614_s30 = int_to_ptr.vmem [resolvable:$false] %s1613_s30 }
  0x4c   : > { %s1615_s14 = scalar_lea.vmem %s1614_s30, 3072  ;;  %p1616_p10 = scmp.lt.s32.totalorder %s1859_s7, %s1614_s30 }
  0x4d   : > { %p1611_p6 = pnand %p1609_p0, %p1597_p5  ;;  %p1617_p3 = scmp.lt.s32.totalorder %s1615_s14, %s1608_s16 }
  0x4f   : > { %p1612_p2 = pneg %p1611_p6  ;;  %p1618_p4 = por %p1617_p3, %p1616_p10 }
  0x51   : > { %p1619_p8 = pnand %p1618_p4, %p1612_p2 }
  0x53   : > { %1622 = shalt.err (!%p1619_p8)
}
  0x54   : > { %s2094_s15 = smov 4   ;;  %s2095_s10 = smov 64  }
  0x55   : > { %1445 = dma.hbm_to_vmem [thread:$0]  (!%p1850_p11), %s1857_s26, 1536, %s1859_s7, %s1861_s8, %s2095_s10, %s2095_s10, %s2094_s15  }
  0x56   : > { %p2096_p6 = scmp.ne.s32.totalorder %s2090_s29, 0 }
  0x57   : > { %s1888_s19 = sand.u32 (!%p2096_p6), 1, %s1687_s22   ;;  %p2097_p4 = scmp.ne.s32.totalorder (!%p2096_p6), %s2088_s27, 0 }
  0x58   : > { %268 = sbr.rel (%p2096_p6) target bundleno = 582 (0x246), region = 44  ;;  %s271_s20 = scalar_lea.sflag (!%p2096_p6), [#allocation3], %s1888_s19 }
  0x59   : > { %s1415_s17 = smul.u32 (!%p2096_p6), 96, %s1888_s19 }
  0x5b   : > { %s1892_s16 = scalar_lea.vmem (!%p2096_p6), [#allocation2], %s1415_s17 }
  0x5d   : > { %1666 = dma.done.wait (%p2097_p4), %s271_s20, 1536  }
  0x5e   : > { %1668 = vsyncadd (%p2097_p4), %s271_s20, 4294965760  ;;  %p2098_p8 = scmp.eq.s32.totalorder %s1762_s25, 0 }
  0x60   : > { %1670 = dma.done.wait (%p2098_p8), [#allocation6], 512   ;;  %p2099_p3 = pmov %p2098_p8 }
  0x62   : > { %1672 = vsyncadd (%p2099_p3), [#allocation6], 4294966784  ;;  %p2100_p11 = pmov %p2099_p3 }
  0x63   : > { %p2101_p5 = pmov %p2099_p3 }
  0x64   : > { %1674 = dma.done.wait (%p2100_p11), [#allocation9], 1024  }
  0x65   : > { %1676 = vsyncadd (%p2101_p5), [#allocation9], 4294966272  ;;  %vm341_vm0 = vsmask.f32 3328  ;;  %vm342_vm1 = vsmask.f32 7440 }
  0x66   : > { %v1497_v0 = vld [vmem:[#allocation5 + $0x8] sm:$0xff]   ;;  %v1498_v1 = vld [vmem:[#allocation7 + $0x8] sm:$0xff]   ;;  %v1499_v2 = vld [vmem:[#allocation5] sm:$0xff]   ;;  %vm580_vm2 = vcmask 261120   ;;  %vm1704_vm4 = vmmov 0   ;;  %vm1042_vm6 = vcmask 1041409  }
  0x67   : > { %1373 = vmatprep.subr.bf16.mxu1 %v1497_v0  ;;  %1353 = vmatprep.subr.bf16.mxu0 %v1498_v1  ;;  %v1500_v3 = vld [vmem:[#allocation7] sm:$0xff]   ;;  %v317_v4 = vld [vmem:[%s1892_s16] sm:$0xf]  ;;  %v318_v5 = vld [vmem:[%s1892_s16 + $0x4] sm:$0xf]  ;;  %vm1044_vm7 = vcmask 1042434  }
  0x68   : > { %1374 = vmatpush3.bf16.msra.mxu1 %v1497_v0  ;;  %1354 = vmatpush3.bf16.msra.mxu0 %v1498_v1  ;;  %v320_v6 = vld [vmem:[%s1892_s16 + $0xc] sm:$0xf]  ;;  %v345_v7 = vshrl.u32 %v317_v4, 16  ;;  %v348_v8 = vshll.u32 %v317_v4, 16  ;;  %v354_v9 = vshll.u32 %v318_v5, 16  ;;  %v358_v10 = vshrl.u32 %v318_v5, 16  ;;  %vm1916_vm3 = vmor %vm341_vm0, %vm342_vm1 }
  0x69   : > { %1375 = vmatprep.subr.bf16.mxu1 %v1499_v2  ;;  %1355 = vmatprep.subr.bf16.mxu0 %v1500_v3  ;;  %v321_v11 = vld [vmem:[%s1892_s16 + $0x10] sm:$0xf]  ;;  %v1292_v12 = vcombine.low %v317_v4, %v318_v5  ;;  %v369_v13 = vshrl.u32 %v320_v6, 16  ;;  %v372_v14 = vshll.u32 %v320_v6, 16  ;;  %v319_v16 = vld [vmem:[%s1892_s16 + $0x8] sm:$0xf] }
  0x6a   : > { %v378_v15 = vshll.u32 %v321_v11, 16  ;;  %v347_v17 = vrot.slane %v345_v7, 4  ;;  %v350_v18 = vrot.slane %v348_v8, 5  ;;  %v356_v19 = vrot.slane %v354_v9, 5  ;;  %v322_v21 = vld [vmem:[%s1892_s16 + $0x14] sm:$0xf] }
  0x6b   : > { %v360_v20 = vrot.slane %v358_v10, 4  ;;  %1377 = vmatprep.mubr.msk.bf16.mxu1 %vm580_vm2, %v1292_v12  ;;  %v371_v22 = vrot.slane %v369_v13, 4  ;;  %v374_v23 = vrot.slane %v372_v14, 5  ;;  %v382_v25 = vshrl.u32 %v321_v11, 16  ;;  %v323_v26 = vld [vmem:[%s1892_s16 + $0x18] sm:$0xf] }
  0x6c   : > { %1376 = vmatpush3.bf16.msra.mxu1 %v1499_v2  ;;  %1356 = vmatpush3.bf16.msra.mxu0 %v1500_v3  ;;  %v380_v24 = vrot.slane %v378_v15, 5  ;;  %v1293_v27 = vcombine.low %v320_v6, %v321_v11  ;;  %v351_v28 = vor.u32 %v350_v18, %v347_v17  ;;  %v364_v30 = vshll.u32 %v319_v16, 16  ;;  %v324_v35 = vld [vmem:[%s1892_s16 + $0x1c] sm:$0xf]  ;;  %v326_v45 = vld [vmem:[%s1892_s16 + $0x24] sm:$0xf] }
  0x6d   : > { %v361_v29 = vor.u32 %v360_v20, %v356_v19  ;;  %v384_v31 = vrot.slane %v382_v25, 4  ;;  %v375_v33 = vor.u32 %v374_v23, %v371_v22  ;;  %v388_v34 = vshll.u32 %v322_v21, 16  ;;  %v327_v50 = vld [vmem:[%s1892_s16 + $0x28] sm:$0xf]  ;;  %v325_v55 = vld [vmem:[%s1892_s16 + $0x20] sm:$0xf] }
  0x6e   : > { %v393_v36 = vshrl.u32 %v323_v26, 16  ;;  %v352_v37 = vrot.slane %v351_v28, 4  ;;  %v366_v39 = vrot.slane %v364_v30, 5  ;;  %v396_v40 = vshll.u32 %v323_v26, 16  ;;  %v328_v60 = vld [vmem:[%s1892_s16 + $0x2c] sm:$0xf] }
  0x6f   : > { %1378 = vmatmul.mubr.msk.bf16.vlgmr.msra.gmra.mxu1 %vm580_vm2, %v1293_v27  ;;  %v362_v38 = vrot.slane %v361_v29, 4  ;;  %v376_v41 = vrot.slane %v375_v33, 4  ;;  %v385_v42 = vor.u32 %v384_v31, %v380_v24  ;;  %v390_v43 = vrot.slane %v388_v34, 5  ;;  %v329_v1 = vld [vmem:[%s1892_s16 + $0x30] sm:$0xf]  ;;  %v1513_v32 = vld [vmem:[#allocation8 + $0x18] sm:$0xff]  }
  0x70   : > { %v395_v44 = vrot.slane %v393_v36, 4  ;;  %v357_v46 = vsel %vm1916_vm3, %v352_v37, %v356_v19  ;;  %v398_v48 = vrot.slane %v396_v40, 5  ;;  %v402_v49 = vshll.u32 %v324_v35, 16  ;;  %v330_v10 = vld [vmem:[%s1892_s16 + $0x34] sm:$0xf]  ;;  %s1273_s18 = sshll.u32 %s1888_s19, 3 }
  0x71   : > { %v367_v47 = vsel %vm1916_vm3, %v362_v38, %v366_v39  ;;  %v381_v52 = vsel %vm1916_vm3, %v376_v41, %v380_v24  ;;  %v386_v53 = vrot.slane %v385_v42, 4  ;;  %v406_v54 = vshrl.u32 %v324_v35, 16  ;;  %v332_v15 = vld [vmem:[%s1892_s16 + $0x3c] sm:$0xf]  ;;  %v333_v20 = vld [vmem:[%s1892_s16 + $0x40] sm:$0xf] }
  0x72   : > { %v1274_v51 = vcombine.low %v357_v46, %v367_v47  ;;  %v404_v56 = vrot.slane %v402_v49, 5  ;;  %v1294_v57 = vcombine.low %v323_v26, %v324_v35  ;;  %v417_v58 = vshrl.u32 %v326_v45, 16  ;;  %v331_v29 = vld [vmem:[%s1892_s16 + $0x38] sm:$0xf]  ;;  %v334_v35 = vld [vmem:[%s1892_s16 + $0x44] sm:$0xf] }
  0x73   : > { %v420_v59 = vshll.u32 %v326_v45, 16  ;;  %v391_v61 = vsel %vm1916_vm3, %v386_v53, %v390_v43  ;;  %v408_v62 = vrot.slane %v406_v54, 4  ;;  %v426_v63 = vshll.u32 %v327_v50, 16  ;;  %v335_v36 = vld [vmem:[%s1892_s16 + $0x48] sm:$0xf]  ;;  %s1321_s8 = sshll.u32 %s1762_s25, 7 }
  0x74   : > { %1357 = vmatprep.mubr.msk.bf16.mxu0 %vm580_vm2, %v1274_v51  ;;  %v430_v0 = vshrl.u32 %v327_v50, 16  ;;  %v1275_v2 = vcombine.low %v381_v52, %v391_v61  ;;  %1381 = vmatprep.mubr.msk.bf16.mxu1 %vm580_vm2, %v1294_v57  ;;  %v419_v3 = vrot.slane %v417_v58, 4  ;;  %v1295_v5 = vcombine.low %v326_v45, %v327_v50  ;;  %v336_v49 = vld [vmem:[%s1892_s16 + $0x4c] sm:$0xf]  ;;  %v338_v58 = vld [vmem:[%s1892_s16 + $0x54] sm:$0xf]  ;;  %s2032_s10 = scalar_lea.hbm %s2081_s6, %s1321_s8 }
  0x75   : > { %v422_v4 = vrot.slane %v420_v59, 5  ;;  %v428_v6 = vrot.slane %v426_v63, 5  ;;  %v399_v8 = vor.u32 %v398_v48, %v395_v44  ;;  %v409_v9 = vor.u32 %v408_v62, %v404_v56  ;;  %v339_v63 = vld [vmem:[%s1892_s16 + $0x58] sm:$0xf]  ;;  %s314_s12 = scalar_lea.vmem [#allocation10], %s1273_s18  ;;  %s1148_s17 = scalar_lea.sflag [#allocation4], %s1888_s19 }
  0x76   : > { %v432_v7 = vrot.slane %v430_v0, 4  ;;  %1358 = vmatmul.mubr.msk.bf16.vlgmr.msra.gmra.mxu0 %vm580_vm2, %v1275_v2  ;;  %v412_v11 = vshll.u32 %v325_v55, 16  ;;  %v436_v13 = vshll.u32 %v328_v60, 16  ;;  %v441_v14 = vshrl.u32 %v329_v1, 16  ;;  %s1161_s30 = sshll.u32 %s314_s12, 4  ;;  %p2104_p1 = scmp.ne.s32.totalorder %s2092_s13, 0  ;;  %s2034_s30 = int_to_ptr.vmem [resolvable:$true] %s1161_s30 }
  0x77   : > { %1382 = vmatmul.mubr.msk.bf16.gmra.mxu1 %vm580_vm2, %v1295_v5  ;;  %v423_v12 = vor.u32 %v422_v4, %v419_v3  ;;  %v400_v16 = vrot.slane %v399_v8, 4  ;;  %v410_v17 = vrot.slane %v409_v9, 4  ;;  %v444_v19 = vshll.u32 %v329_v1, 16  ;;  %s1623_s20 = scalar_lea.vmem %s2034_s30, 128  ;;  %s1705_s25 = smov [#allocation10]  }
  0x78   : > { %v433_v18 = vor.u32 %v432_v7, %v428_v6  ;;  %v414_v21 = vrot.slane %v412_v11, 5  ;;  %v438_v23 = vrot.slane %v436_v13, 5  ;;  %v443_v24 = vrot.slane %v441_v14, 4  ;;  %p1624_p7 = scmp.ne.s32.totalorder %s2034_s30, %s1623_s20 }
  0x79   : > { %v424_v22 = vrot.slane %v423_v12, 4  ;;  %v405_v25 = vsel %vm1916_vm3, %v400_v16, %v404_v56  ;;  %v446_v27 = vrot.slane %v444_v19, 5  ;;  %v450_v28 = vshll.u32 %v330_v10, 16  ;;  %v337_v16 = vld [vmem:[%s1892_s16 + $0x50] sm:$0xf] }
  0x7a   : > { %v434_v26 = vrot.slane %v433_v18, 4  ;;  %v415_v30 = vsel %vm1916_vm3, %v410_v17, %v414_v21  ;;  %v454_v33 = vshrl.u32 %v330_v10, 16  ;;  %v1296_v34 = vcombine.low %v329_v1, %v330_v10  ;;  %v340_v21 = vld [vmem:[%s1892_s16 + $0x5c] sm:$0xf]  ;;  %p1625_p12 = pnand %p1624_p7, %p2104_p1  ;;  %s1627_s16 = sshll.u32 %s1705_s25, 4  ;;  %s1628_s16 = int_to_ptr.vmem [resolvable:$false] %s1627_s16 }
  0x7b   : > { %v429_v31 = vsel %vm1916_vm3, %v424_v22, %v428_v6  ;;  %v1276_v37 = vcombine.low %v405_v25, %v415_v30  ;;  %v452_v39 = vrot.slane %v450_v28, 5  ;;  %v465_v40 = vshrl.u32 %v332_v15, 16  ;;  %s1629_s27 = scalar_lea.vmem %s1628_s16, 256  ;;  %p1630_p13 = scmp.lt.s32.totalorder %s2034_s30, %s1628_s16 }
  0x7c   : > { %v439_v38 = vsel %vm1916_vm3, %v434_v26, %v438_v23  ;;  %v456_v42 = vrot.slane %v454_v33, 4  ;;  %1385 = vmatprep.mubr.msk.bf16.mxu1 %vm580_vm2, %v1296_v34  ;;  %v468_v43 = vshll.u32 %v332_v15, 16  ;;  %v474_v44 = vshll.u32 %v333_v20, 16  ;;  %p1626_p9 = pneg %p1625_p12  ;;  %p1631_p0 = scmp.lt.s32.totalorder %s1629_s27, %s1623_s20 }
  0x7d   : > { %v1277_v41 = vcombine.low %v429_v31, %v439_v38  ;;  %1361 = vmatprep.mubr.msk.bf16.mxu0 %vm580_vm2, %v1276_v37  ;;  %v467_v45 = vrot.slane %v465_v40, 4  ;;  %v478_v46 = vshrl.u32 %v333_v20, 16  ;;  %v1297_v47 = vcombine.low %v332_v15, %v333_v20 }
  0x7e   : > { %v447_v48 = vor.u32 %v446_v27, %v443_v24  ;;  %v470_v50 = vrot.slane %v468_v43, 5  ;;  %v476_v51 = vrot.slane %v474_v44, 5  ;;  %v457_v52 = vor.u32 %v456_v42, %v452_v39  ;;  %p1632_p2 = por %p1631_p0, %p1630_p13 }
  0x7f   : > { %1362 = vmatmul.mubr.msk.bf16.gmra.mxu0 %vm580_vm2, %v1277_v41  ;;  %v460_v53 = vshll.u32 %v331_v29, 16  ;;  %v480_v54 = vrot.slane %v478_v46, 4  ;;  %1386 = vmatmul.mubr.msk.bf16.gmra.mxu1 %vm580_vm2, %v1297_v47  ;;  %v484_v56 = vshll.u32 %v334_v35, 16  ;;  %v489_v57 = vshrl.u32 %v335_v36, 16  ;;  %v1509_v47 = vld [vmem:[#allocation8 + $0x38] sm:$0xff]  }
  0x80   : > { %v448_v55 = vrot.slane %v447_v48, 4  ;;  %v458_v59 = vrot.slane %v457_v52, 4  ;;  %v471_v61 = vor.u32 %v470_v50, %v467_v45  ;;  %v492_v62 = vshll.u32 %v335_v36, 16  ;;  %v1511_v50 = vld [vmem:[#allocation8 + $0x28] sm:$0xff]   ;;  %v1514_v52 = vld [vmem:[#allocation8 + $0x10] sm:$0xff]   ;;  %p1633_p10 = pnand %p1632_p2, %p1626_p9 }
  0x81   : > { %v462_v60 = vrot.slane %v460_v53, 5  ;;  %v481_v1 = vor.u32 %v480_v54, %v476_v51  ;;  %v486_v2 = vrot.slane %v484_v56, 5  ;;  %v491_v3 = vrot.slane %v489_v57, 4  ;;  %v1515_v53 = vld [vmem:[#allocation8 + $0x8] sm:$0xff]   ;;  %v1516_v54 = vld [vmem:[#allocation8] sm:$0xff]  }
  0x82   : > { %v453_v0 = vsel %vm1916_vm3, %v448_v55, %v452_v39  ;;  %v472_v5 = vrot.slane %v471_v61, 4  ;;  %v494_v6 = vrot.slane %v492_v62, 5  ;;  %v498_v7 = vshll.u32 %v336_v49, 16 }
  0x83   : > { %v463_v4 = vsel %vm1916_vm3, %v458_v59, %v462_v60  ;;  %v482_v9 = vrot.slane %v481_v1, 4  ;;  %v502_v10 = vshrl.u32 %v336_v49, 16  ;;  %v1298_v11 = vcombine.low %v335_v36, %v336_v49  ;;  %v1510_v49 = vld [vmem:[#allocation8 + $0x30] sm:$0xff]  }
  0x84   : > { %v1278_v8 = vcombine.low %v453_v0, %v463_v4  ;;  %v477_v12 = vsel %vm1916_vm3, %v472_v5, %v476_v51  ;;  %v500_v13 = vrot.slane %v498_v7, 5  ;;  %v513_v14 = vshrl.u32 %v338_v58, 16  ;;  %v1512_v51 = vld [vmem:[#allocation8 + $0x20] sm:$0xff]  }
  0x85   : > { %v516_v15 = vshll.u32 %v338_v58, 16  ;;  %v487_v17 = vsel %vm1916_vm3, %v482_v9, %v486_v2  ;;  %v504_v18 = vrot.slane %v502_v10, 4  ;;  %1389 = vmatprep.mubr.msk.bf16.mxu1 %vm580_vm2, %v1298_v11  ;;  %v522_v19 = vshll.u32 %v339_v63, 16 }
  0x86   : > { %1365 = vmatprep.mubr.msk.bf16.mxu0 %vm580_vm2, %v1278_v8  ;;  %v526_v20 = vshrl.u32 %v339_v63, 16  ;;  %v1279_v22 = vcombine.low %v477_v12, %v487_v17  ;;  %v515_v23 = vrot.slane %v513_v14, 4  ;;  %v1299_v25 = vcombine.low %v338_v58, %v339_v63 }
  0x87   : > { %v518_v24 = vrot.slane %v516_v15, 5  ;;  %v524_v26 = vrot.slane %v522_v19, 5  ;;  %v495_v28 = vor.u32 %v494_v6, %v491_v3  ;;  %v505_v29 = vor.u32 %v504_v18, %v500_v13  ;;  %v1989_v6 = vld [vmem:[%s2078_s3] ss:$0 sm:$0xff] }
  0x88   : > { %v528_v27 = vrot.slane %v526_v20, 4  ;;  %1366 = vmatmul.mubr.msk.bf16.gmra.mxu0 %vm580_vm2, %v1279_v22  ;;  %1390 = vmatmul.mubr.msk.bf16.gmra.mxu1 %vm580_vm2, %v1299_v25  ;;  %v508_v30 = vshll.u32 %v337_v16, 16  ;;  %v532_v33 = vshll.u32 %v340_v21, 16  ;;  %v1703_v48 = vmov 0.0  }
  0x89   : > { %v519_v31 = vor.u32 %v518_v24, %v515_v23  ;;  %v496_v34 = vrot.slane %v495_v28, 4  ;;  %v506_v35 = vrot.slane %v505_v29, 4  ;;  %1393 = vmatprep.subr.bf16.mxu0 %v1703_v48  ;;  %v914_v58 = vlaneseq }
  0x8a   : > { %v529_v36 = vor.u32 %v528_v27, %v524_v26  ;;  %v510_v37 = vrot.slane %v508_v30, 5  ;;  %v534_v39 = vrot.slane %v532_v33, 5  ;;  %1394 = vmatpush3.bf16.msra.mxu0 %v1509_v47  ;;  %vm1046_vm8 = vcmask 1043459  }
  0x8b   : > { %v520_v38 = vrot.slane %v519_v31, 4  ;;  %v501_v40 = vsel %vm1916_vm3, %v496_v34, %v500_v13  ;;  %1395 = vmatprep.subr.bf16.mxu0 %v1703_v48  ;;  %v915_v61 = vshrl.u32 %v914_v58, 7  ;;  %vm1048_vm9 = vcmask 1044484  }
  0x8c   : > { %v530_v41 = vrot.slane %v529_v36, 4  ;;  %v511_v42 = vsel %vm1916_vm3, %v506_v35, %v510_v37  ;;  %vm1050_vm10 = vcmask 1045509   ;;  %vm1052_vm11 = vcmask 1046534  }
  0x8d   : > { %v525_v43 = vsel %vm1916_vm3, %v520_v38, %v524_v26  ;;  %v1280_v44 = vcombine.low %v501_v40, %v511_v42  ;;  %v1984_v4 = vadd.s32 8, %v915_v61  ;;  %vm1054_vm12 = vcmask 1047559  }
  0x8e   : > { %v535_v45 = vsel %vm1916_vm3, %v530_v41, %v534_v39  ;;  %1396 = vmatpush3.bf16.msra.mxu0 %v1510_v49 }
  0x8f   : > { %v1281_v46 = vcombine.low %v525_v43, %v535_v45  ;;  %1369 = vmatprep.mubr.msk.bf16.mxu0 %vm580_vm2, %v1280_v44  ;;  %1397 = vmatprep.subr.bf16.mxu0 %v1703_v48  ;;  %vm918_vm5 = vcmp.lt.s32.totalorder %v1984_v4, 11 }
  0x91   : > { %1370 = vmatmul.mubr.msk.bf16.gmra.mxu0 %vm580_vm2, %v1281_v46 }
  0x92   : > { %1398 = vmatpush3.bf16.msra.mxu0 %v1511_v50  ;;  %1409 = vmatprep.mubr.msk.bf16.mxu0 %vm1704_vm4, %v1703_v48 }
  0x93   : > { %1399 = vmatprep.subr.bf16.mxu0 %v1703_v48 }
  0x96   : > { %1400 = vmatpush3.bf16.msra.mxu0 %v1512_v51 }
  0x97   : > { %1401 = vmatprep.subr.bf16.mxu0 %v1703_v48 }
  0x9a   : > { %1402 = vmatpush3.bf16.msra.mxu0 %v1513_v32 }
  0x9b   : > { %1403 = vmatprep.subr.bf16.mxu0 %v1703_v48 }
  0x9e   : > { %1404 = vmatpush3.bf16.msra.mxu0 %v1514_v52 }
  0x9f   : > { %1405 = vmatprep.subr.bf16.mxu0 %v1703_v48 }
  0xa2   : > { %1406 = vmatpush3.bf16.msra.mxu0 %v1515_v53 }
  0xa3   : > { %1407 = vmatprep.subr.bf16.mxu0 %v1703_v48 }
  0xa6   : > { %1408 = vmatpush3.bf16.msra.mxu0 %v1516_v54 }
 0x12f   : > { %v1379_v55 = vpop.f32.mrf.mxu1 }
 0x131   : > { %v812_v56 = vpop.f32.mrf.mxu1 }
 0x133   : > { %v1380_v57 = vpop.f32.mrf.mxu1 }
 0x135   : > { %v815_v59 = vpop.f32.mrf.mxu1 }
 0x136   : > { %v1359_v60 = vpop.f32.mrf.mxu0 }
 0x137   : > { %v1383_v62 = vpop.f32.mrf.mxu1  ;;  %v821_v1 = vadd.f32 %v1379_v55, %v1359_v60 }
 0x138   : > { %v639_v63 = vpop.f32.mrf.mxu0 }
 0x139   : > { %v828_v0 = vpop.f32.mrf.mxu1  ;;  %v813_v2 = vadd.f32 %v812_v56, %v639_v63  ;;  %v884_v12 = vadd.f32 %v1989_v6, %v821_v1 }
 0x13a   : > { %v1360_v3 = vpop.f32.mrf.mxu0 }
 0x13b   : > { %v1384_v5 = vpop.f32.mrf.mxu1  ;;  %v824_v7 = vadd.f32 %v1380_v57, %v1360_v3  ;;  %v882_v13 = vadd.f32 %v1989_v6, %v813_v2  ;;  %v900_v23 = vmax.f32 %v884_v12, 0.0 }
 0x13c   : > { %v642_v8 = vpop.f32.mrf.mxu0 }
 0x13d   : > { %v831_v9 = vpop.f32.mrf.mxu1  ;;  %v885_v10 = vadd.f32 %v1989_v6, %v824_v7  ;;  %v816_v11 = vadd.f32 %v815_v59, %v642_v8  ;;  %v898_v24 = vmax.f32 %v882_v13, 0.0 }
 0x13f   : > { %v1363_v14 = vpop.f32.mrf.mxu0  ;;  %v901_v15 = vmax.f32 %v885_v10, 0.0  ;;  %v883_v16 = vadd.f32 %v1989_v6, %v816_v11  ;;  %v1387_v17 = vpop.f32.mrf.mxu1 }
 0x140   : > { %v837_v18 = vadd.f32 %v1383_v62, %v1363_v14 }
 0x141   : > { %v655_v19 = vpop.f32.mrf.mxu0  ;;  %v926_v20 = vsel %vm918_vm5, %v901_v15, 0.0  ;;  %v899_v21 = vmax.f32 %v883_v16, 0.0  ;;  %v844_v22 = vpop.f32.mrf.mxu1 }
 0x142   : > { %v829_v25 = vadd.f32 %v828_v0, %v655_v19  ;;  %v946_v30 = vmax.f32 %v900_v23, %v926_v20  ;;  %v888_v33 = vadd.f32 %v1989_v6, %v837_v18 }
 0x143   : > { %v1364_v26 = vpop.f32.mrf.mxu0  ;;  %v924_v27 = vsel %vm918_vm5, %v899_v21, 0.0  ;;  %v1388_v29 = vpop.f32.mrf.mxu1 }
 0x144   : > { %v840_v28 = vadd.f32 %v1384_v5, %v1364_v26  ;;  %v939_v31 = vmax.f32 %v898_v24, %v924_v27  ;;  %v886_v37 = vadd.f32 %v1989_v6, %v829_v25  ;;  %v947_v42 = vrot.slane %v946_v30, 4 }
 0x145   : > { %v658_v34 = vpop.f32.mrf.mxu0  ;;  %v847_v38 = vpop.f32.mrf.mxu1  ;;  %v904_v43 = vmax.f32 %v888_v33, 0.0 }
 0x146   : > { %v889_v35 = vadd.f32 %v1989_v6, %v840_v28  ;;  %v832_v36 = vadd.f32 %v831_v9, %v658_v34  ;;  %v940_v39 = vrot.slane %v939_v31, 4  ;;  %v902_v47 = vmax.f32 %v886_v37, 0.0 }
 0x147   : > { %v948_v53 = vmax.f32 %v946_v30, %v947_v42 }
 0x148   : > { %v905_v40 = vmax.f32 %v889_v35, 0.0  ;;  %v887_v41 = vadd.f32 %v1989_v6, %v832_v36  ;;  %v1367_v44 = vpop.f32.mrf.mxu0  ;;  %v1391_v51 = vpop.f32.mrf.mxu1  ;;  %v941_v32 = vmax.f32 %v939_v31, %v940_v39 }
 0x149   : > { %v853_v49 = vadd.f32 %v1387_v17, %v1367_v44  ;;  %v949_v2 = vrot.slane %v948_v53, 2 }
 0x14a   : > { %v930_v45 = vsel %vm918_vm5, %v905_v40, 0.0  ;;  %v903_v46 = vmax.f32 %v887_v41, 0.0  ;;  %v671_v50 = vpop.f32.mrf.mxu0  ;;  %v860_v62 = vpop.f32.mrf.mxu1  ;;  %v942_v63 = vrot.slane %v941_v32, 2 }
 0x14b   : > { %v960_v48 = vmax.f32 %v904_v43, %v930_v45  ;;  %v845_v57 = vadd.f32 %v844_v22, %v671_v50  ;;  %v892_v60 = vadd.f32 %v1989_v6, %v853_v49  ;;  %v950_v19 = vmax.f32 %v948_v53, %v949_v2 }
 0x14c   : > { %v928_v52 = vsel %vm918_vm5, %v903_v46, 0.0  ;;  %v1368_v55 = vpop.f32.mrf.mxu0  ;;  %v1392_v15 = vpop.f32.mrf.mxu1  ;;  %v943_v16 = vmax.f32 %v941_v32, %v942_v63 }
 0x14d   : > { %v953_v54 = vmax.f32 %v902_v47, %v928_v52  ;;  %v961_v56 = vrot.slane %v960_v48, 4  ;;  %v856_v58 = vadd.f32 %v1388_v29, %v1368_v55  ;;  %v890_v8 = vadd.f32 %v1989_v6, %v845_v57 }
 0x14e   : > { %v674_v61 = vpop.f32.mrf.mxu0  ;;  %v908_v12 = vmax.f32 %v892_v60, 0.0  ;;  %v863_v30 = vpop.f32.mrf.mxu1  ;;  %v944_v33 = vrot.slane %v943_v16, 1  ;;  %v951_v37 = vrot.slane %v950_v19, 1 }
 0x14f   : > { %v954_v59 = vrot.slane %v953_v54, 4  ;;  %v893_v0 = vadd.f32 %v1989_v6, %v856_v58  ;;  %v848_v1 = vadd.f32 %v847_v38, %v674_v61  ;;  %v962_v7 = vmax.f32 %v960_v48, %v961_v56 }
 0x150   : > { %v906_v25 = vmax.f32 %v890_v8, 0.0  ;;  %v945_v47 = vmax.f32 %v943_v16, %v944_v33 }
 0x151   : > { %v955_v3 = vmax.f32 %v953_v54, %v954_v59  ;;  %v1371_v5 = vpop.f32.mrf.mxu0  ;;  %v909_v9 = vmax.f32 %v893_v0, 0.0  ;;  %v891_v10 = vadd.f32 %v1989_v6, %v848_v1  ;;  %v963_v24 = vrot.slane %v962_v7, 2 }
 0x152   : > { %v869_v13 = vadd.f32 %v1391_v51, %v1371_v5  ;;  %v952_v51 = vmax.f32 %v950_v19, %v951_v37  ;;  %v995_v59 = vpack.c.bf16 %v945_v47, %v945_v47 }
 0x153   : > { %v956_v11 = vrot.slane %v955_v3, 2  ;;  %v687_v14 = vpop.f32.mrf.mxu0  ;;  %v934_v17 = vsel %vm918_vm5, %v909_v9, 0.0  ;;  %v907_v18 = vmax.f32 %v891_v10, 0.0  ;;  %v964_v41 = vmax.f32 %v962_v7, %v963_v24 }
 0x154   : > { %v974_v21 = vmax.f32 %v908_v12, %v934_v17  ;;  %v861_v22 = vadd.f32 %v860_v62, %v687_v14  ;;  %v896_v29 = vadd.f32 %v1989_v6, %v869_v13  ;;  %v996_v0 = vpack.c.bf16 %v952_v51, %v952_v51 }
 0x155   : > { %v957_v20 = vmax.f32 %v955_v3, %v956_v11  ;;  %v1372_v23 = vpop.f32.mrf.mxu0  ;;  %v932_v26 = vsel %vm918_vm5, %v907_v18, 0.0  ;;  %v965_v54 = vrot.slane %v964_v41, 1  ;;  %v1034_v8 = vunpack.c.l.b16 %v995_v59 }
 0x156   : > { %v872_v27 = vadd.f32 %v1392_v15, %v1372_v23  ;;  %v975_v28 = vrot.slane %v974_v21, 4  ;;  %v967_v34 = vmax.f32 %v906_v25, %v932_v26  ;;  %v894_v40 = vadd.f32 %v1989_v6, %v861_v22 }
 0x157   : > { %v690_v31 = vpop.f32.mrf.mxu0  ;;  %v958_v38 = vrot.slane %v957_v20, 1  ;;  %v912_v46 = vmax.f32 %v896_v29, 0.0  ;;  %v966_v1 = vmax.f32 %v964_v41, %v965_v54  ;;  %v1035_v12 = vunpack.c.l.b16 %v996_v0 }
 0x158   : > { %v897_v35 = vadd.f32 %v1989_v6, %v872_v27  ;;  %v864_v36 = vadd.f32 %v863_v30, %v690_v31  ;;  %v976_v39 = vmax.f32 %v974_v21, %v975_v28  ;;  %v968_v42 = vrot.slane %v967_v34, 4 }
 0x159   : > { %v959_v32 = vmax.f32 %v957_v20, %v958_v38  ;;  %v910_v52 = vmax.f32 %v894_v40, 0.0  ;;  %v998_v13 = vpack.c.bf16 %v966_v1, %v966_v1  ;;  %v1043_v18 = vsel %vm1042_vm6, %v1035_v12, %v1034_v8  ;;  %v1311_v38 = vld [vmem:[%s2080_s5] ss:$0 sm:$0xff] }
 0x15a   : > { %v913_v43 = vmax.f32 %v897_v35, 0.0  ;;  %v895_v44 = vadd.f32 %v1989_v6, %v864_v36  ;;  %v977_v45 = vrot.slane %v976_v39, 2  ;;  %v969_v48 = vmax.f32 %v967_v34, %v968_v42 }
 0x15b   : > { %v997_v61 = vpack.c.bf16 %v959_v32, %v959_v32  ;;  %v1037_v23 = vunpack.c.l.b16 %v998_v13 }
 0x15c   : > { %v938_v49 = vsel %vm918_vm5, %v913_v43, 0.0  ;;  %v911_v50 = vmax.f32 %v895_v44, 0.0  ;;  %v978_v55 = vmax.f32 %v976_v39, %v977_v45  ;;  %v970_v56 = vrot.slane %v969_v48, 2 }
 0x15d   : > { %v988_v53 = vmax.f32 %v912_v46, %v938_v49  ;;  %v1036_v10 = vunpack.c.l.b16 %v997_v61 }
 0x15e   : > { %v936_v57 = vsel %vm918_vm5, %v911_v50, 0.0  ;;  %v971_v60 = vmax.f32 %v969_v48, %v970_v56  ;;  %v979_v2 = vrot.slane %v978_v55, 1 }
 0x15f   : > { %v989_v58 = vrot.slane %v988_v53, 4  ;;  %v981_v6 = vmax.f32 %v910_v52, %v936_v57  ;;  %v1045_v19 = vsel %vm1044_vm7, %v1036_v10, %v1043_v18 }
 0x160   : > { %v972_v3 = vrot.slane %v971_v60, 1  ;;  %v980_v14 = vmax.f32 %v978_v55, %v979_v2  ;;  %v1047_v26 = vsel %vm1046_vm8, %v1037_v23, %v1045_v19 }
 0x161   : > { %v990_v62 = vmax.f32 %v988_v53, %v989_v58  ;;  %v982_v63 = vrot.slane %v981_v6, 4 }
 0x162   : > { %v973_v9 = vmax.f32 %v971_v60, %v972_v3  ;;  %v1000_v24 = vpack.c.bf16 %v980_v14, %v980_v14 }
 0x163   : > { %v991_v5 = vrot.slane %v990_v62, 2  ;;  %v983_v7 = vmax.f32 %v981_v6, %v982_v63 }
 0x164   : > { %v999_v15 = vpack.c.bf16 %v973_v9, %v973_v9  ;;  %v1039_v30 = vunpack.c.l.b16 %v1000_v24 }
 0x165   : > { %v992_v4 = vmax.f32 %v990_v62, %v991_v5  ;;  %v984_v11 = vrot.slane %v983_v7, 2 }
 0x166   : > { %v1038_v20 = vunpack.c.l.b16 %v999_v15 }
 0x167   : > { %v993_v16 = vrot.slane %v992_v4, 1  ;;  %v985_v17 = vmax.f32 %v983_v7, %v984_v11 }
 0x168   : > { %v1049_v28 = vsel %vm1048_vm9, %v1038_v20, %v1047_v26 }
 0x169   : > { %v994_v21 = vmax.f32 %v992_v4, %v993_v16  ;;  %v986_v22 = vrot.slane %v985_v17, 1  ;;  %v1051_v34 = vsel %vm1050_vm10, %v1039_v30, %v1049_v28 }
 0x16b   : > { %v987_v25 = vmax.f32 %v985_v17, %v986_v22  ;;  %v1002_v27 = vpack.c.bf16 %v994_v21, %v994_v21 }
 0x16d   : > { %v1001_v29 = vpack.c.bf16 %v987_v25, %v987_v25  ;;  %v1041_v33 = vunpack.c.l.b16 %v1002_v27 }
 0x16f   : > { %v1040_v31 = vunpack.c.l.b16 %v1001_v29 }
 0x171   : > { %v1053_v35 = vsel %vm1052_vm11, %v1040_v31, %v1051_v34 }
 0x172   : > { %v1055_v36 = vsel %vm1054_vm12, %v1041_v33, %v1053_v35 }
 0x173   : > { %v1056_v37 = vpack.c.b16 %v1055_v36, %v1055_v36 }
 0x175   : > { %1410 = vmatmul.mubr.bf16.vlgmr.msra.gmra.mxu0 %v1056_v37 }
 0x235   : > { %v1140_v39 = vpop.f32.mrf.mxu0 }
 0x236   : > { %v1141_v40 = vadd.f32 %v1311_v38, %v1140_v39 }
 0x237   : > { %v1411_v41 = vpop.f32.mrf.mxu0 }
 0x238   : > { %1146 = vst [vmem:[%s314_s12] sm:$0xff] %v1141_v40 }
 0x239   : > { %v1143_v42 = vpop.f32.mrf.mxu0 }
 0x23a   : > { %1636 = shalt.err (!%p1633_p10)
}
 0x23b   : > { %s1637_s29 = scalar_lea.hbm %s2032_s10, 128  ;;  %s1641_s26 = scalar_lea.hbm %s2081_s6, 256 }
 0x23c   : > { %p1638_p6 = scmp.ne.s32.totalorder %s2032_s10, %s1637_s29  ;;  %p1642_p3 = scmp.lt.s32.totalorder %s2032_s10, %s2081_s6 }
 0x23d   : > { %p1643_p11 = scmp.lt.s32.totalorder %s1641_s26, %s1637_s29 }
 0x23e   : > { %p1639_p4 = pnand %p1638_p6, %p2104_p1 }
 0x23f   : > { %p1644_p5 = por %p1643_p11, %p1642_p3 }
 0x240   : > { %p1640_p8 = pneg %p1639_p4 }
 0x242   : > { %p1645_p7 = pnand %p1644_p5, %p1640_p8 }
 0x244   : > { %1648 = shalt.err (!%p1645_p7)
}
 0x245   : > { %1430 = dma.vmem_to_hbm [thread:$0]  (%p2104_p1), %s2034_s30, 128, %s2032_s10, %s1148_s17   ;;  %v1412_v43 = vpop.f32.mrf.mxu0 }
 0x246 PF: > { %s1173_s12 = sand.u32 1, %s1683_s21   ;;  %p2105_p12 = scmp.ne.s32.totalorder %s2089_s28, 0 }
 0x247   : > { %p2106_p9 = scmp.ge.s32.totalorder %s1695_s24, 2  ;;  %s1174_s14 = scalar_lea.sflag [#allocation4], %s1173_s12 }
 0x249   : > { %p1447_p13 = pnand %p2106_p9, %p2105_p12 }
 0x24b   : > { %p1448_p0 = pneg %p1447_p13 }
 0x24d   : > { %1678 = dma.done.wait (%p1448_p0), %s1174_s14, 128  }
 0x24e   : > { %1680 = vsyncadd (%p1448_p0), %s1174_s14, 4294967168  ;;  %p21_p2 = scmp.ge.s32.totalorder %s1830_s9, 4   ;;  %s2107_s21 = smov %s1687_s22 }
 0x24f   : > { %s2108_s22 = smov %s1691_s23  ;;  %s2109_s23 = smov %s1840_s11 }
 0x250   : > { %s2110_s24 = smov %s1830_s9  ;;  %23 = sbr.rel (!%p21_p2) target bundleno = 7 (0x7), region = 101 }
 0x255   :  { %1179 = vsyncpa [#allocation3], 1 }
 0x256   :  { %1181 = vsyncpa [#allocation3 + $0x1], 1 }
 0x257   :  { %1182 = vsyncpa [#allocation6], 1 }
 0x258   :  { %1183 = vsyncpa [#allocation9], 1 }
 0x259   :  { %1184 = vsyncpa [#allocation4], 1 }
 0x25a   :  { %1186 = vsyncpa [#allocation4 + $0x1], 1 }

</bundles_post_ra>
